<compile_context>
chip_gen: v6e
topology: v6e:2x2x1
jax: 0.10.0
libtpu: 0.0.40
codegen_flags: <defaults>
</compile_context>

<pallas_src>
import functools

import jax
import jax.numpy as jnp
from jax import lax
from jax.experimental import pallas as pl
from jax.experimental.pallas import tpu as pltpu


F_REAL = 18          # board_size (16) + 1 + 1
BIAS_COL = F_REAL    # constant-1.0 input column used to fold b1 into w1
F_PAD = 32           # padded feature dim (mult. of 8, bf16-tile friendly)
H1 = 256
H2 = 64


def nnmnn_kernel(x_ref, w1_ref, w2_ref, b2_ref, w3_ref, b3_ref, o_ref):
    # x_ref : (TB, F_PAD) bf16  -- batch-major tile (column BIAS_COL == 1.0)
    # w1_ref: (H1, F_PAD) bf16  -- b1 folded into column BIAS_COL
    # w2_ref: (H2, H1)    bf16
    # b2_ref: (H2, 1)     f32
    # w3_ref: (H2, 1)     f32
    # b3_ref: (1,)        f32 in SMEM
    # o_ref : (1, TB)     f32  -- lane-dense output, batch on lanes

    # fc1 (+ folded b1) + relu: contract the feature dim of both operands so the
    # result is (H1, TB) with the batch on the 128-lane axis.
    h1 = lax.dot_general(
        w1_ref[...], x_ref[...],
        dimension_numbers=(((1,), (1,)), ((), ())),
        preferred_element_type=jnp.float32,
    )
    h1 = jnp.maximum(h1, 0.0).astype(jnp.bfloat16)   # dropout = identity (eval)

    # fc2 + relu   (dropout = identity in eval mode)
    h2 = jnp.dot(w2_ref[...], h1, preferred_element_type=jnp.float32) + b2_ref[...]
    h2 = jnp.maximum(h2, 0.0)

    # fc3: (64 -> 1) as VPU multiply + sublane reduction (skip the Nx1 MXU push)
    out = jnp.sum(h2 * w3_ref[...], axis=0, keepdims=True) + b3_ref[0]
    o_ref[...] = out.astype(o_ref.dtype)


def _pick_tiling(batch, tb_max):
    """Batch tile (multiple of 128) and padded batch size with >= 2 grid steps."""
    tb = min(tb_max, max(128, pl.cdiv(pl.cdiv(batch, 2), 128) * 128))
    n_steps = max(2, pl.cdiv(batch, tb))          # >= 2 so v7x can use both TCs
    return tb, n_steps * tb


@functools.partial(jax.jit, static_argnames=("tb_max",))
def nnmnn_forward(x, packed_params, *, tb_max=512):
    """x: (B, 18) float32 board encodings. Returns (B, 1) float32 values."""
    w1, w2, b2, w3, b3 = packed_params
    B, F = x.shape
    f_pad = w1.shape[1]
    tb, b_pad = _pick_tiling(B, tb_max)

    # Single cheap pad/cast pass (no transpose, no 128-wide feature pad):
    # real features, a constant-1.0 bias column, zero feature/batch padding.
    xp = jnp.zeros((b_pad, f_pad), jnp.bfloat16)
    xp = xp.at[:B, :F].set(x.astype(jnp.bfloat16))
    xp = xp.at[:, BIAS_COL].set(1.0)

    out = pl.pallas_call(
        nnmnn_kernel,
        out_shape=jax.ShapeDtypeStruct((1, b_pad), jnp.float32),
        grid=(b_pad // tb,),
        in_specs=[
            pl.BlockSpec((tb, f_pad), lambda i: (i, 0)),        # activations: tiled over batch
            pl.BlockSpec(w1.shape, lambda i: (0, 0)),           # weights: VMEM-resident
            pl.BlockSpec(w2.shape, lambda i: (0, 0)),
            pl.BlockSpec(b2.shape, lambda i: (0, 0)),
            pl.BlockSpec(w3.shape, lambda i: (0, 0)),
            pl.BlockSpec(memory_space=pltpu.MemorySpace.SMEM),  # scalar bias b3
        ],
        out_specs=pl.BlockSpec((1, tb), lambda i: (0, i)),      # lane-dense output
        compiler_params=pltpu.CompilerParams(
            dimension_semantics=("parallel",)),
    )(xp, w1, w2, b2, w3, b3)

    return out[0, :B].reshape(B, 1)


def init_params(key, in_features):
    """Torch-style (fan_in, fan_out) weights with nn.Linear default init."""
    dims = [(in_features, H1), (H1, H2), (H2, 1)]
    params = []
    for fan_in, fan_out in dims:
        kw, kb, key = jax.random.split(key, 3)
        bound = 1.0 / (fan_in ** 0.5)
        params.append(jax.random.uniform(kw, (fan_in, fan_out), jnp.float32, -bound, bound))
        params.append(jax.random.uniform(kb, (fan_out,), jnp.float32, -bound, bound))
    return params


def pack_params(params, f_pad=F_PAD):
    """Repack raw (fan_in, fan_out) params into the kernel's layout."""
    w1, b1, w2, b2, w3, b3 = params
    F = w1.shape[0]
    # (H1, F_PAD) with b1 folded into the constant-1.0 input column, then bf16.
    w1_p = jnp.zeros((H1, f_pad), jnp.float32)
    w1_p = w1_p.at[:, :F].set(w1.T)
    w1_p = w1_p.at[:, BIAS_COL].set(b1)
    return (
        w1_p.astype(jnp.bfloat16),                  # (256, 32)
        w2.T.astype(jnp.bfloat16),                  # (64, 256)
        b2.reshape(H2, 1).astype(jnp.float32),      # (64, 1)
        w3.reshape(H2, 1).astype(jnp.float32),      # (64, 1) for the VPU reduction
        b3.reshape(1).astype(jnp.float32),          # scalar, lives in SMEM
    )


if __name__ == "__main__":
    # game.getBoardSize() -> 16, so input features = 16 + 1 + 1 = 18
    board_size = 16
    in_features = board_size + 2
    batch = 8

    key = jax.random.PRNGKey(0)
    kx, kp = jax.random.split(key)
    x = jax.random.normal(kx, (batch, in_features), jnp.float32)

    raw_params = init_params(kp, in_features)
    packed = pack_params(raw_params)

    out = nnmnn_forward(x, packed)
    out = jax.block_until_ready(out)

    # Pure-JAX f32 reference check (standard orientation)
    w1, b1, w2, b2, w3, b3 = raw_params
    ref = jnp.maximum(x @ w1 + b1, 0.0)
    ref = jnp.maximum(ref @ w2 + b2, 0.0)
    ref = ref @ w3 + b3

    assert out.shape == (batch, 1)
    # bf16 MXU path: tolerance widened from the f32 2e-3 accordingly.
    assert jnp.allclose(out, ref, atol=1e-2, rtol=1e-2), float(jnp.max(jnp.abs(out - ref)))

    print("KERNEL_OK")
</pallas_src>

<mosaic_0001>
module attributes {stable_mosaic.version = 11 : i64} {
  func.func @nnmnn_kernel(%arg0: i32, %arg1: memref<128x32xbf16, #tpu.memory_space<vmem>>, %arg2: memref<256x32xbf16, #tpu.memory_space<vmem>>, %arg3: memref<64x256xbf16, #tpu.memory_space<vmem>>, %arg4: memref<64x1xf32, #tpu.memory_space<vmem>>, %arg5: memref<64x1xf32, #tpu.memory_space<vmem>>, %arg6: memref<1xf32, #tpu.memory_space<smem>>, %arg7: memref<1x128xf32, #tpu.memory_space<vmem>>) attributes {dimension_semantics = [#tpu.dimension_semantics<parallel>], iteration_bounds = array<i64: 2>, scalar_prefetch = 0 : i64, scratch_operands = 0 : i64, tpu.core_type = #tpu.core_type<tc>, window_params = [{transform_indices = @transform_0, window_bounds = array<i64: 128, 32>}, {pipeline_mode = #tpu.pipeline_mode<synchronous>, transform_indices = @transform_1, window_bounds = array<i64: 256, 32>}, {pipeline_mode = #tpu.pipeline_mode<synchronous>, transform_indices = @transform_2, window_bounds = array<i64: 64, 256>}, {pipeline_mode = #tpu.pipeline_mode<synchronous>, transform_indices = @transform_3, window_bounds = array<i64: 64, 1>}, {pipeline_mode = #tpu.pipeline_mode<synchronous>, transform_indices = @transform_4, window_bounds = array<i64: 64, 1>}, {transform_indices = @transform_5, window_bounds = array<i64: 1>}, {transform_indices = @transform_6, window_bounds = array<i64: 1, 128>}]} {
    %c0 = arith.constant 0 : index
    %c0_0 = arith.constant 0 : index
    %0 = vector.load %arg2[%c0, %c0_0] : memref<256x32xbf16, #tpu.memory_space<vmem>>, vector<256x32xbf16>
    %c0_1 = arith.constant 0 : index
    %c0_2 = arith.constant 0 : index
    %1 = vector.load %arg1[%c0_1, %c0_2] : memref<128x32xbf16, #tpu.memory_space<vmem>>, vector<128x32xbf16>
    %cst = arith.constant dense<0.000000e+00> : vector<256x128xf32>
    %2 = tpu.matmul %0, %1, %cst {dimension_numbers = #tpu.dot_dimension_numbers<[1], [1], [0], [0], [0, 0, 1, 0], [], []>} : vector<256x32xbf16>, vector<128x32xbf16>, vector<256x128xf32> -> vector<256x128xf32>
    %cst_3 = arith.constant 0.000000e+00 : f32
    %3 = vector.broadcast %cst_3 : f32 to vector<256x128xf32>
    %4 = arith.maximumf %2, %3 : vector<256x128xf32>
    %5 = arith.truncf %4 : vector<256x128xf32> to vector<256x128xbf16>
    %c0_4 = arith.constant 0 : index
    %c0_5 = arith.constant 0 : index
    %6 = vector.load %arg3[%c0_4, %c0_5] : memref<64x256xbf16, #tpu.memory_space<vmem>>, vector<64x256xbf16>
    %cst_6 = arith.constant dense<0.000000e+00> : vector<64x128xf32>
    %7 = tpu.matmul %6, %5, %cst_6 {dimension_numbers = #tpu.dot_dimension_numbers<[1], [0], [0], [1], [0, 0, 1, 1], [], []>} : vector<64x256xbf16>, vector<256x128xbf16>, vector<64x128xf32> -> vector<64x128xf32>
    %c0_7 = arith.constant 0 : index
    %c0_8 = arith.constant 0 : index
    %8 = vector.load %arg4[%c0_7, %c0_8] : memref<64x1xf32, #tpu.memory_space<vmem>>, vector<64x1xf32>
    %9 = vector.broadcast %8 : vector<64x1xf32> to vector<64x128xf32>
    %10 = arith.addf %7, %9 : vector<64x128xf32>
    %cst_9 = arith.constant 0.000000e+00 : f32
    %11 = vector.broadcast %cst_9 : f32 to vector<64x128xf32>
    %12 = arith.maximumf %10, %11 : vector<64x128xf32>
    %c0_10 = arith.constant 0 : index
    %c0_11 = arith.constant 0 : index
    %13 = vector.load %arg5[%c0_10, %c0_11] : memref<64x1xf32, #tpu.memory_space<vmem>>, vector<64x1xf32>
    %14 = vector.broadcast %13 : vector<64x1xf32> to vector<64x128xf32>
    %15 = arith.mulf %12, %14 : vector<64x128xf32>
    %cst_12 = arith.constant dense<0.000000e+00> : vector<128xf32>
    %16 = vector.multi_reduction <add>, %15, %cst_12 [0] : vector<64x128xf32> to vector<128xf32>
    %17 = vector.shape_cast %16 : vector<128xf32> to vector<1x128xf32>
    %c0_13 = arith.constant 0 : index
    %18 = memref.load %arg6[%c0_13] : memref<1xf32, #tpu.memory_space<smem>>
    %19 = vector.broadcast %18 : f32 to vector<1x128xf32>
    %20 = arith.addf %17, %19 : vector<1x128xf32>
    %c0_14 = arith.constant 0 : index
    %c0_15 = arith.constant 0 : index
    %21 = vector.load %arg7[%c0_14, %c0_15] : memref<1x128xf32, #tpu.memory_space<vmem>>, vector<1x128xf32>
    tpu.vector_store %arg7[%c0_14, %c0_15], %20 {strides = array<i32>} : memref<1x128xf32, #tpu.memory_space<vmem>>, vector<1x128xf32>,
    return
  }
  func.func @transform_0(%arg0: i32) -> (i32, i32) {
    %c0_i32 = arith.constant 0 : i32
    %c0_i32_0 = arith.constant 0 : i32
    return %arg0, %c0_i32 : i32, i32
  }
  func.func @transform_1(%arg0: i32) -> (i32, i32) {
    %c0_i32 = arith.constant 0 : i32
    %c0_i32_0 = arith.constant 0 : i32
    %c0_i32_1 = arith.constant 0 : i32
    return %c0_i32, %c0_i32_0 : i32, i32
  }
  func.func @transform_2(%arg0: i32) -> (i32, i32) {
    %c0_i32 = arith.constant 0 : i32
    %c0_i32_0 = arith.constant 0 : i32
    %c0_i32_1 = arith.constant 0 : i32
    return %c0_i32, %c0_i32_0 : i32, i32
  }
  func.func @transform_3(%arg0: i32) -> (i32, i32) {
    %c0_i32 = arith.constant 0 : i32
    %c0_i32_0 = arith.constant 0 : i32
    %c0_i32_1 = arith.constant 0 : i32
    return %c0_i32, %c0_i32_0 : i32, i32
  }
  func.func @transform_4(%arg0: i32) -> (i32, i32) {
    %c0_i32 = arith.constant 0 : i32
    %c0_i32_0 = arith.constant 0 : i32
    %c0_i32_1 = arith.constant 0 : i32
    return %c0_i32, %c0_i32_0 : i32, i32
  }
  func.func @transform_5(%arg0: i32) -> i32 {
    %c0_i32 = arith.constant 0 : i32
    %c0_i32_0 = arith.constant 0 : i32
    return %c0_i32 : i32
  }
  func.func @transform_6(%arg0: i32) -> (i32, i32) {
    %c0_i32 = arith.constant 0 : i32
    %c0_i32_0 = arith.constant 0 : i32
    return %c0_i32, %arg0 : i32, i32
  }
}

</mosaic_0001>

<bundles_post_ra>
// kernel: nnmnn_forward.1
= control target key start
LH: loop header
LB: loop body
LE: loop exit
PB: predicated region body
PF: predicated region fallthrough
CT: control target
= control target key end

     0   :  { %s1262_s23 = smov 0   ;;  %s1451_s0 = inlined_call_operand.vmem [shape: bf16[256,32], index: 0, kind: input, shape index: {}]   ;;  %s1452_s1 = inlined_call_operand.vmem [shape: bf16[256,32], index: 1, kind: input, shape index: {}]   ;;  %s1453_s2 = inlined_call_operand.vmem [shape: bf16[64,256], index: 2, kind: input, shape index: {}]   ;;  %s1454_s3 = inlined_call_operand.vmem [shape: f32[64,1], index: 3, kind: input, shape index: {}]   ;;  %s1455_s4 = inlined_call_operand.vmem [shape: f32[64,1], index: 4, kind: input, shape index: {}]   ;;  %s1456_s5 = inlined_call_operand.<no memory space> [shape: f32[1], index: 5, kind: input, shape index: {}]   ;;  %s1457_s6 = inlined_call_operand.vmem [shape: f32[1,256], index: 6, kind: output, shape index: {}]  }
   0x1   :  { %11 = sst [smem:[#allocation2]] %s1456_s5 }
   0x2 LB: > { %s1268_s24 = sadd.s32 4294967295, %s1221_s23   ;;  %p995_p0 = scmp.ge.s32.totalorder %s1221_s23, 1  ;;  %s1221_s23 = sphi %s1262_s23, %s17_s23  }
   0x3   : > { %p214_p1 = scmp.lt.s32.totalorder %s1221_s23, 3 }
   0x5   : > { %p215_p2 = pnand %p995_p0, %p214_p1 }
   0x6   : > { %s996_s25 = sshll.u32 (!%p215_p2), %s1268_s24, 4  ;;  %s940_s16 = sld [smem:[#allocation2]] (!%p215_p2) }
   0x7   : > { %218 = sbr.rel (%p215_p2) target bundleno = 617 (0x269), region = 44  ;;  %p243_p3 = scmp.lt.s32.totalorder (!%p215_p2), %s996_s25, 31 }
   0x8   : > { %p248_p4 = scmp.lt.s32.totalorder (!%p215_p2), %s1268_s24, 1 }
   0xc   : > { %v1187_v0 = vld [vmem:[%s1452_s1] sm:$0xff]   ;;  %vm420_vm0 = vcmask 261120   ;;  %s1459_s25 = smov (!%p243_p3, %s996_s25), 31  ;;  %v1188_v17 = vld [vmem:[%s1452_s1 + $0x8] sm:$0xff]   ;;  %v1189_v18 = vld [vmem:[%s1452_s1 + $0x10] sm:$0xff]   ;;  %v1223_v35 = vmov 0  }
   0xd   : > { %1128 = vmatprep.mubr.msk.bf16.mxu0 %vm420_vm0, %v1187_v0  ;;  %s997_s27 = sshll.u32 %s1459_s25, 2  ;;  %v1190_v19 = vld [vmem:[%s1452_s1 + $0x18] sm:$0xff]   ;;  %v1191_v20 = vld [vmem:[%s1452_s1 + $0x20] sm:$0xff]   ;;  %v1192_v21 = vld [vmem:[%s1452_s1 + $0x28] sm:$0xff]   ;;  %1177 = vset.pattern.permute.xlu0 %v1223_v35  ;;  %s1461_s24 = smov (!%p248_p4, %s1268_s24), 1 }
   0xe   : > { %s246_s30 = scalar_lea.vmem %s1451_s0, %s997_s27  ;;  %v1193_v22 = vld [vmem:[%s1452_s1 + $0x30] sm:$0xff]   ;;  %v1194_v23 = vld [vmem:[%s1452_s1 + $0x38] sm:$0xff]   ;;  %v1195_v24 = vld [vmem:[%s1452_s1 + $0x40] sm:$0xff]   ;;  %1178 = vset.pattern.permute.xlu1 %v1223_v35  ;;  %s250_s19 = scalar_lea.vmem %s1457_s6, %s1461_s24 }
   0xf   : > { %v1179_v1 = vld [vmem:[%s246_s30 + $0x38] sm:$0xff]   ;;  %v1180_v2 = vld [vmem:[%s246_s30 + $0x30] sm:$0xff]   ;;  %v1181_v5 = vld [vmem:[%s246_s30 + $0x28] sm:$0xff]  }
  0x10   : > { %1160 = vmatprep.subr.msk.bf16.mxu0 %vm420_vm0, %v1179_v1  ;;  %v491_v3 = vsel %vm420_vm0, %v1179_v1, 0  ;;  %v488_v4 = vsel %vm420_vm0, %v1180_v2, 0  ;;  %v485_v6 = vsel %vm420_vm0, %v1181_v5, 0  ;;  %v1182_v7 = vld [vmem:[%s246_s30 + $0x20] sm:$0xff]   ;;  %v1183_v9 = vld [vmem:[%s246_s30 + $0x18] sm:$0xff]   ;;  %v1184_v11 = vld [vmem:[%s246_s30 + $0x10] sm:$0xff]  }
  0x11   : > { %1113 = vmatpush3.bf16.xpose.msra.mxu0 %v491_v3  ;;  %v482_v8 = vsel %vm420_vm0, %v1182_v7, 0  ;;  %v479_v10 = vsel %vm420_vm0, %v1183_v9, 0  ;;  %v476_v12 = vsel %vm420_vm0, %v1184_v11, 0  ;;  %v1185_v13 = vld [vmem:[%s246_s30 + $0x8] sm:$0xff]   ;;  %v1186_v15 = vld [vmem:[%s246_s30] sm:$0xff]   ;;  %v1197_v26 = vld [vmem:[%s1452_s1 + $0x50] sm:$0xff]  }
  0x12   : > { %1161 = vmatprep.subr.msk.bf16.mxu0 %vm420_vm0, %v1180_v2  ;;  %v473_v14 = vsel %vm420_vm0, %v1185_v13, 0  ;;  %v470_v16 = vsel %vm420_vm0, %v1186_v15, 0  ;;  %v1196_v25 = vld [vmem:[%s1452_s1 + $0x48] sm:$0xff]   ;;  %v1198_v27 = vld [vmem:[%s1452_s1 + $0x58] sm:$0xff]   ;;  %v1199_v28 = vld [vmem:[%s1452_s1 + $0x60] sm:$0xff]  }
  0x13   : > { %v1200_v29 = vld [vmem:[%s1452_s1 + $0x68] sm:$0xff]   ;;  %v1201_v30 = vld [vmem:[%s1452_s1 + $0x70] sm:$0xff]   ;;  %v1202_v31 = vld [vmem:[%s1452_s1 + $0x78] sm:$0xff]  }
  0x14   : > { %v1205_v32 = vld [vmem:[%s1453_s2 + $0x4] ss:$8 sps:$4 sm:$0xff]   ;;  %v712_v34 = vld [vmem:[%s1454_s3 + $0x10] sm:$0xff]  ;;  %v713_v37 = vld [vmem:[%s1454_s3 + $0x18] sm:$0xff] }
  0x15   : > { %830 = vmatprep.mubr.bf16.mxu1 %v1205_v32  ;;  %v710_v33 = vld [vmem:[%s1454_s3] sm:$0xff]  ;;  %730 = vperm.xlu1 %1178, %v712_v34   ;;  %v711_v36 = vld [vmem:[%s1454_s3 + $0x8] sm:$0xff]  ;;  %v873_v44 = vld [vmem:[%s1455_s4 + $0x10] sm:$0xff] }
  0x16   : > { %720 = vperm.xlu0 %1177, %v710_v33   ;;  %v871_v39 = vld [vmem:[%s1455_s4] sm:$0xff]  ;;  %v872_v40 = vld [vmem:[%s1455_s4 + $0x8] sm:$0xff]  ;;  %v874_v53 = vld [vmem:[%s1455_s4 + $0x18] sm:$0xff] }
  0x17   : > { %v714_v43 = vld [vmem:[%s1454_s3 + $0x20] sm:$0xff]  ;;  %v715_v52 = vld [vmem:[%s1454_s3 + $0x28] sm:$0xff]  ;;  %v716_v57 = vld [vmem:[%s1454_s3 + $0x30] sm:$0xff] }
  0x18   : > { %v875_v58 = vld [vmem:[%s1455_s4 + $0x20] sm:$0xff]  ;;  %v717_v2 = vld [vmem:[%s1454_s3 + $0x38] sm:$0xff]  ;;  %v876_v3 = vld [vmem:[%s1455_s4 + $0x28] sm:$0xff] }
  0x19   : > { %1115 = vmatpush3.bf16.xpose.msra.mxu0 %v488_v4  ;;  %735 = vperm.xlu1 %1178, %v713_v37  }
  0x1a   : > { %1162 = vmatprep.subr.msk.bf16.mxu0 %vm420_vm0, %v1181_v5  ;;  %725 = vperm.xlu0 %1177, %v711_v36  }
  0x1d   : > { %886 = vperm.xlu1 %1178, %v872_v40  }
  0x1e   : > { %881 = vperm.xlu0 %1177, %v871_v39  }
  0x21   : > { %1117 = vmatpush3.bf16.xpose.msra.mxu0 %v485_v6  ;;  %891 = vperm.xlu1 %1178, %v873_v44  }
  0x22   : > { %1163 = vmatprep.subr.msk.bf16.mxu0 %vm420_vm0, %v1182_v7  ;;  %740 = vperm.xlu0 %1177, %v714_v43   ;;  %v877_v7 = vld [vmem:[%s1455_s4 + $0x30] sm:$0xff] }
  0x25   : > { %896 = vperm.xlu1 %1178, %v874_v53  }
  0x26   : > { %745 = vperm.xlu0 %1177, %v715_v52  }
  0x29   : > { %1119 = vmatpush3.bf16.xpose.msra.mxu0 %v482_v8  ;;  %901 = vperm.xlu1 %1178, %v875_v58   ;;  %v878_v8 = vld [vmem:[%s1455_s4 + $0x38] sm:$0xff] }
  0x2a   : > { %1164 = vmatprep.subr.msk.bf16.mxu0 %vm420_vm0, %v1183_v9  ;;  %750 = vperm.xlu0 %1177, %v716_v57  }
  0x2d   : > { %906 = vperm.xlu1 %1178, %v876_v3  }
  0x2e   : > { %755 = vperm.xlu0 %1177, %v717_v2  }
  0x31   : > { %1121 = vmatpush3.bf16.xpose.msra.mxu0 %v479_v10  ;;  %916 = vperm.xlu1 %1178, %v878_v8   ;;  %v1214_v8 = vld [vmem:[%s1453_s2 + $0x30] ss:$8 sps:$4 sm:$0xff]  }
  0x32   : > { %1165 = vmatprep.subr.msk.bf16.mxu0 %vm420_vm0, %v1184_v11  ;;  %911 = vperm.xlu0 %1177, %v877_v7   ;;  %v1212_v7 = vld [vmem:[%s1453_s2 + $0x34] ss:$8 sps:$4 sm:$0xff]  }
  0x39   : > { %1123 = vmatpush3.bf16.xpose.msra.mxu0 %v476_v12 }
  0x3a   : > { %1166 = vmatprep.subr.msk.bf16.mxu0 %vm420_vm0, %v1185_v13 }
  0x41   : > { %1125 = vmatpush3.bf16.xpose.msra.mxu0 %v473_v14 }
  0x42   : > { %1167 = vmatprep.subr.msk.bf16.mxu0 %vm420_vm0, %v1186_v15 }
  0x49   : > { %1127 = vmatpush3.bf16.xpose.msra.mxu0 %v470_v16 }
  0x50   : > { %1129 = vmatmul.mubr.msk.bf16.vlgmr.msra.gmra.mxu0 %vm420_vm0, %v1188_v17 }
  0x51   : > { %1132 = vmatprep.mubr.msk.bf16.mxu0 %vm420_vm0, %v1189_v18 }
  0x58   : > { %1133 = vmatmul.mubr.msk.bf16.gmra.mxu0 %vm420_vm0, %v1190_v19 }
  0x59   : > { %1136 = vmatprep.mubr.msk.bf16.mxu0 %vm420_vm0, %v1191_v20 }
  0x60   : > { %1137 = vmatmul.mubr.msk.bf16.gmra.mxu0 %vm420_vm0, %v1192_v21 }
  0x61   : > { %1140 = vmatprep.mubr.msk.bf16.mxu0 %vm420_vm0, %v1193_v22 }
  0x68   : > { %1141 = vmatmul.mubr.msk.bf16.gmra.mxu0 %vm420_vm0, %v1194_v23 }
  0x69   : > { %1144 = vmatprep.mubr.msk.bf16.mxu0 %vm420_vm0, %v1195_v24 }
  0x70   : > { %1145 = vmatmul.mubr.msk.bf16.gmra.mxu0 %vm420_vm0, %v1196_v25 }
  0x71   : > { %1148 = vmatprep.mubr.msk.bf16.mxu0 %vm420_vm0, %v1197_v26 }
  0x78   : > { %1149 = vmatmul.mubr.msk.bf16.gmra.mxu0 %vm420_vm0, %v1198_v27 }
  0x79   : > { %1152 = vmatprep.mubr.msk.bf16.mxu0 %vm420_vm0, %v1199_v28 }
  0x80   : > { %1153 = vmatmul.mubr.msk.bf16.gmra.mxu0 %vm420_vm0, %v1200_v29 }
  0x81   : > { %1156 = vmatprep.mubr.msk.bf16.mxu0 %vm420_vm0, %v1201_v30 }
  0x88   : > { %1157 = vmatmul.mubr.msk.bf16.gmra.mxu0 %vm420_vm0, %v1202_v31 }
 0x110   : > { %v1130_v38 = vpop.f32.mrf.mxu0 }
 0x111   : > { %v656_v45 = vmax.f32 %v1130_v38, 0.0 }
 0x112   : > { %v527_v41 = vpop.f32.mrf.mxu0 }
 0x113   : > { %v654_v48 = vmax.f32 %v527_v41, 0.0 }
 0x114   : > { %v1131_v42 = vpop.f32.mrf.mxu0 }
 0x115   : > { %v657_v46 = vmax.f32 %v1131_v42, 0.0 }
 0x116   : > { %v530_v47 = vpop.f32.mrf.mxu0 }
 0x117   : > { %v1383_v49 = vpack.c.bf16 %v657_v46, %v656_v45  ;;  %v655_v50 = vmax.f32 %v530_v47, 0.0 }
 0x118   : > { %v1134_v51 = vpop.f32.mrf.mxu0 }
 0x119   : > { %v1391_v54 = vpack.c.bf16 %v655_v50, %v654_v48  ;;  %v660_v59 = vmax.f32 %v1134_v51, 0.0 }
 0x11a   : > { %v543_v55 = vpop.f32.mrf.mxu0 }
 0x11b   : > { %v658_v62 = vmax.f32 %v543_v55, 0.0 }
 0x11c   : > { %v1135_v56 = vpop.f32.mrf.mxu0 }
 0x11d   : > { %v661_v60 = vmax.f32 %v1135_v56, 0.0 }
 0x11e   : > { %v546_v61 = vpop.f32.mrf.mxu0 }
 0x11f   : > { %v1399_v63 = vpack.c.bf16 %v661_v60, %v660_v59  ;;  %v659_v0 = vmax.f32 %v546_v61, 0.0 }
 0x120   : > { %v1138_v1 = vpop.f32.mrf.mxu0 }
 0x121   : > { %v1407_v4 = vpack.c.bf16 %v659_v0, %v658_v62  ;;  %v664_v47 = vmax.f32 %v1138_v1, 0.0 }
 0x122   : > { %v559_v5 = vpop.f32.mrf.mxu0 }
 0x123   : > { %v662_v55 = vmax.f32 %v559_v5, 0.0 }
 0x124   : > { %v1139_v6 = vpop.f32.mrf.mxu0 }
 0x125   : > { %v665_v43 = vmax.f32 %v1139_v6, 0.0  ;;  %v1203_v6 = vld [vmem:[%s1453_s2] ss:$8 sps:$4 sm:$0xff]  }
 0x126   : > { %v562_v9 = vpop.f32.mrf.mxu0 }
 0x127   : > { %v691_v50 = vpack.c.bf16 %v665_v43, %v664_v47  ;;  %v663_v51 = vmax.f32 %v562_v9, 0.0  ;;  %v721_v9 = vpop.permute.xlu0 %720 }
 0x128   : > { %v1142_v10 = vpop.f32.mrf.mxu0 }
 0x129   : > { %v668_v32 = vmax.f32 %v1142_v10, 0.0  ;;  %v690_v57 = vpack.c.bf16 %v663_v51, %v662_v55  ;;  %v731_v10 = vpop.permute.xlu1 %730 }
 0x12a   : > { %v575_v11 = vpop.f32.mrf.mxu0 }
 0x12b   : > { %v666_v41 = vmax.f32 %v575_v11, 0.0  ;;  %v726_v11 = vpop.permute.xlu0 %725 }
 0x12c   : > { %v1143_v12 = vpop.f32.mrf.mxu0 }
 0x12d   : > { %v669_v28 = vmax.f32 %v1143_v12, 0.0  ;;  %v736_v12 = vpop.permute.xlu1 %735 }
 0x12e   : > { %v578_v13 = vpop.f32.mrf.mxu0 }
 0x12f   : > { %v667_v37 = vmax.f32 %v578_v13, 0.0  ;;  %v693_v38 = vpack.c.bf16 %v669_v28, %v668_v32 }
 0x130   : > { %v1146_v14 = vpop.f32.mrf.mxu0 }
 0x131   : > { %v692_v44 = vpack.c.bf16 %v667_v37, %v666_v41  ;;  %v672_v0 = vmax.f32 %v1146_v14, 0.0  ;;  %v882_v14 = vpop.permute.xlu0 %881 }
 0x132   : > { %v1415_v15 = vpop.f32.mrf.mxu0 }
 0x133   : > { %v670_v3 = vmax.f32 %v1415_v15, 0.0 }
 0x134   : > { %v1147_v16 = vpop.f32.mrf.mxu0 }
 0x135   : > { %v673_v61 = vmax.f32 %v1147_v16, 0.0 }
 0x136   : > { %v594_v17 = vpop.f32.mrf.mxu0 }
 0x137   : > { %v695_v1 = vpack.c.bf16 %v673_v61, %v672_v0  ;;  %v671_v2 = vmax.f32 %v594_v17, 0.0  ;;  %v887_v17 = vpop.permute.xlu1 %886 }
 0x138   : > { %v1150_v18 = vpop.f32.mrf.mxu0 }
 0x139   : > { %v676_v56 = vmax.f32 %v1150_v18, 0.0  ;;  %v694_v5 = vpack.c.bf16 %v671_v2, %v670_v3 }
 0x13a   : > { %v607_v19 = vpop.f32.mrf.mxu0 }
 0x13b   : > { %v674_v60 = vmax.f32 %v607_v19, 0.0  ;;  %v741_v19 = vpop.permute.xlu0 %740 }
 0x13c   : > { %v1151_v20 = vpop.f32.mrf.mxu0 }
 0x13d   : > { %v677_v52 = vmax.f32 %v1151_v20, 0.0 }
 0x13e   : > { %v610_v21 = vpop.f32.mrf.mxu0 }
 0x13f   : > { %v697_v58 = vpack.c.bf16 %v677_v52, %v676_v56  ;;  %v675_v59 = vmax.f32 %v610_v21, 0.0 }
 0x140   : > { %v1154_v22 = vpop.f32.mrf.mxu0 }
 0x141   : > { %v680_v42 = vmax.f32 %v1154_v22, 0.0  ;;  %v696_v62 = vpack.c.bf16 %v675_v59, %v674_v60 }
 0x142   : > { %v623_v23 = vpop.f32.mrf.mxu0 }
 0x143   : > { %v678_v48 = vmax.f32 %v623_v23, 0.0  ;;  %v892_v23 = vpop.permute.xlu1 %891 }
 0x144   : > { %v1155_v24 = vpop.f32.mrf.mxu0 }
 0x145   : > { %v681_v39 = vmax.f32 %v1155_v24, 0.0 }
 0x146   : > { %v626_v25 = vpop.f32.mrf.mxu0 }
 0x147   : > { %v699_v45 = vpack.c.bf16 %v681_v39, %v680_v42  ;;  %v679_v46 = vmax.f32 %v626_v25, 0.0 }
 0x148   : > { %v1158_v26 = vpop.f32.mrf.mxu0 }
 0x149   : > { %v684_v30 = vmax.f32 %v1158_v26, 0.0  ;;  %v698_v53 = vpack.c.bf16 %v679_v46, %v678_v48 }
 0x14a   : > { %v639_v27 = vpop.f32.mrf.mxu0 }
 0x14b   : > { %v682_v34 = vmax.f32 %v639_v27, 0.0  ;;  %v746_v27 = vpop.permute.xlu0 %745 }
 0x14c   : > { %v1159_v29 = vpop.f32.mrf.mxu0 }
 0x14d   : > { %v685_v31 = vmax.f32 %v1159_v29, 0.0 }
 0x14e   : > { %v642_v33 = vpop.f32.mrf.mxu0 }
 0x14f   : > { %v683_v35 = vmax.f32 %v642_v33, 0.0  ;;  %v701_v36 = vpack.c.bf16 %v685_v31, %v684_v30  ;;  %v751_v39 = vpop.permute.xlu0 %750 }
 0x151   : > { %v700_v40 = vpack.c.bf16 %v683_v35, %v682_v34  ;;  %1072 = vmatprep.subr.bf16.mxu1 %v701_v36  ;;  %v897_v34 = vpop.permute.xlu1 %896 }
 0x152   : > { %1073 = vmatpush3.bf16.msra.mxu1 %v693_v38 }
 0x153   : > { %1074 = vmatprep.subr.bf16.mxu1 %v700_v40  ;;  %v756_v56 = vpop.permute.xlu0 %755 }
 0x155   : > { %v902_v48 = vpop.permute.xlu1 %901 }
 0x156   : > { %1075 = vmatpush3.bf16.msra.mxu1 %v692_v44 }
 0x157   : > { %1076 = vmatprep.subr.bf16.mxu1 %v699_v45 }
 0x159   : > { %v907_v3 = vpop.permute.xlu1 %906 }
 0x15a   : > { %1077 = vmatpush3.bf16.msra.mxu1 %v691_v50 }
 0x15b   : > { %1078 = vmatprep.subr.bf16.mxu1 %v698_v53 }
 0x15e   : > { %1079 = vmatpush3.bf16.msra.mxu1 %v690_v57 }
 0x15f   : > { %1080 = vmatprep.subr.bf16.mxu1 %v697_v58 }
 0x162   : > { %1081 = vmatpush3.bf16.msra.mxu1 %v1399_v63  ;;  %v1206_v63 = vld [vmem:[%s1453_s2 + $0x14] ss:$8 sps:$4 sm:$0xff]  }
 0x163   : > { %1082 = vmatprep.subr.bf16.mxu1 %v696_v62 }
 0x166   : > { %1083 = vmatpush3.bf16.msra.mxu1 %v1407_v4  ;;  %v1208_v4 = vld [vmem:[%s1453_s2 + $0x10] ss:$8 sps:$4 sm:$0xff]  }
 0x167   : > { %1084 = vmatprep.subr.bf16.mxu1 %v695_v1 }
 0x16a   : > { %1085 = vmatpush3.bf16.msra.mxu1 %v1383_v49  ;;  %v1209_v49 = vld [vmem:[%s1453_s2 + $0x24] ss:$8 sps:$4 sm:$0xff]  }
 0x16b   : > { %1086 = vmatprep.subr.bf16.mxu1 %v694_v5 }
 0x16e   : > { %1087 = vmatpush3.bf16.msra.mxu1 %v1391_v54  ;;  %v1211_v54 = vld [vmem:[%s1453_s2 + $0x20] ss:$8 sps:$4 sm:$0xff]  }
 0x171   : > { %831 = vmatmul.mubr.bf16.vlgmr.msra.gmra.mxu1 %v1203_v6 }
 0x172   : > { %838 = vmatprep.mubr.bf16.mxu1 %v1206_v63 }
 0x179   : > { %839 = vmatmul.mubr.bf16.gmra.mxu1 %v1208_v4 }
 0x17a   : > { %846 = vmatprep.mubr.bf16.mxu1 %v1209_v49 }
 0x181   : > { %847 = vmatmul.mubr.bf16.gmra.mxu1 %v1211_v54  ;;  %v912_v54 = vpop.permute.xlu0 %911 }
 0x182   : > { %854 = vmatprep.mubr.bf16.mxu1 %v1212_v7 }
 0x189   : > { %855 = vmatmul.mubr.bf16.gmra.mxu1 %v1214_v8 }
 0x231   : > { %v1088_v13 = vpop.f32.mrf.mxu1 }
 0x233   : > { %v1089_v15 = vpop.f32.mrf.mxu1 }
 0x234   : > { %v1090_v25 = vadd.f32 %v1089_v15, %v1088_v13 }
 0x235   : > { %v1091_v16 = vpop.f32.mrf.mxu1 }
 0x236   : > { %v833_v32 = vadd.f32 %v1090_v25, %v721_v9 }
 0x237   : > { %v1092_v18 = vpop.f32.mrf.mxu1 }
 0x238   : > { %v1093_v22 = vadd.f32 %v1092_v18, %v1091_v16  ;;  %v863_v41 = vmax.f32 %v833_v32, 0.0 }
 0x239   : > { %v1094_v20 = vpop.f32.mrf.mxu1 }
 0x23a   : > { %v836_v29 = vadd.f32 %v1093_v22, %v726_v11  ;;  %v919_v51 = vmul.f32 %v882_v14, %v863_v41 }
 0x23b   : > { %v1095_v21 = vpop.f32.mrf.mxu1 }
 0x23c   : > { %v1096_v26 = vadd.f32 %v1095_v21, %v1094_v20  ;;  %v864_v36 = vmax.f32 %v836_v29, 0.0  ;;  %v941_v21 = vstv %s940_s16 }
 0x23d   : > { %v1097_v24 = vpop.f32.mrf.mxu1 }
 0x23e   : > { %v841_v33 = vadd.f32 %v1096_v26, %v731_v10  ;;  %v920_v45 = vmul.f32 %v887_v17, %v864_v36 }
 0x23f   : > { %v1098_v28 = vpop.f32.mrf.mxu1 }
 0x240   : > { %v1099_v30 = vadd.f32 %v1098_v28, %v1097_v24  ;;  %v865_v42 = vmax.f32 %v841_v33, 0.0  ;;  %v927_v58 = vadd.f32 %v920_v45, %v919_v51 }
 0x241   : > { %v1100_v31 = vpop.f32.mrf.mxu1 }
 0x242   : > { %v844_v37 = vadd.f32 %v1099_v30, %v736_v12  ;;  %v921_v52 = vmul.f32 %v892_v23, %v865_v42  ;;  %v917_v12 = vpop.permute.xlu1 %916 }
 0x243   : > { %v1101_v35 = vpop.f32.mrf.mxu1 }
 0x244   : > { %v1102_v38 = vadd.f32 %v1101_v35, %v1100_v31  ;;  %v866_v46 = vmax.f32 %v844_v37, 0.0  ;;  %v928_v0 = vadd.f32 %v927_v58, %v921_v52 }
 0x245   : > { %v1103_v40 = vpop.f32.mrf.mxu1 }
 0x246   : > { %v849_v43 = vadd.f32 %v1102_v38, %v741_v19  ;;  %v922_v59 = vmul.f32 %v897_v34, %v866_v46 }
 0x247   : > { %v1104_v44 = vpop.f32.mrf.mxu1 }
 0x248   : > { %v1105_v47 = vadd.f32 %v1104_v44, %v1103_v40  ;;  %v867_v53 = vmax.f32 %v849_v43, 0.0  ;;  %v929_v6 = vadd.f32 %v928_v0, %v922_v59 }
 0x249   : > { %v1106_v50 = vpop.f32.mrf.mxu1 }
 0x24a   : > { %v852_v55 = vadd.f32 %v1105_v47, %v746_v27  ;;  %v923_v1 = vmul.f32 %v902_v48, %v867_v53 }
 0x24b   : > { %v1107_v57 = vpop.f32.mrf.mxu1 }
 0x24c   : > { %v868_v60 = vmax.f32 %v852_v55, 0.0  ;;  %v1108_v61 = vadd.f32 %v1107_v57, %v1106_v50  ;;  %v930_v7 = vadd.f32 %v929_v6, %v923_v1 }
 0x24d   : > { %v1109_v62 = vpop.f32.mrf.mxu1 }
 0x24e   : > { %v857_v2 = vadd.f32 %v1108_v61, %v751_v39  ;;  %v924_v63 = vmul.f32 %v907_v3, %v868_v60 }
 0x24f   : > { %v1110_v5 = vpop.f32.mrf.mxu1 }
 0x250   : > { %v869_v4 = vmax.f32 %v857_v2, 0.0  ;;  %v1111_v49 = vadd.f32 %v1110_v5, %v1109_v62  ;;  %v931_v10 = vadd.f32 %v930_v7, %v924_v63 }
 0x252   : > { %v925_v8 = vmul.f32 %v912_v54, %v869_v4  ;;  %v860_v9 = vadd.f32 %v1111_v49, %v756_v56 }
 0x254   : > { %v870_v11 = vmax.f32 %v860_v9, 0.0  ;;  %v932_v13 = vadd.f32 %v931_v10, %v925_v8 }
 0x256   : > { %v926_v14 = vmul.f32 %v917_v12, %v870_v11 }
 0x258   : > { %v933_v15 = vadd.f32 %v932_v13, %v926_v14 }
 0x25a   : > { %v934_v16 = vrot.slane %v933_v15, 4 }
 0x25c   : > { %v935_v17 = vadd.f32 %v934_v16, %v933_v15 }
 0x25e   : > { %v936_v18 = vrot.slane %v935_v17, 2 }
 0x260   : > { %v937_v19 = vadd.f32 %v936_v18, %v935_v17 }
 0x262   : > { %v938_v20 = vrot.slane %v937_v19, 1 }
 0x264   : > { %v939_v22 = vadd.f32 %v938_v20, %v937_v19 }
 0x266   : > { %v942_v23 = vadd.f32 %v941_v21, %v939_v22 }
 0x268   : > { %943 = vst [vmem:[%s250_s19] sm:$0x1] %v942_v23 }
 0x269 PF: > { %s17_s23 = sadd.s32 1, %s1221_s23  }
 0x26a   : > { %p14_p5 = scmp.ge.s32.totalorder %s17_s23, 4  }
 0x26c   :  { %16 = sbr.rel (!%p14_p5) target bundleno = 2 (0x2), region = 74 }

</bundles_post_ra>
